<compile_context>
chip_gen: v5e
topology: v5e:2x2
jax: 0.10.0
libtpu: 0.0.40
codegen_flags: <defaults>
</compile_context>

<pallas_src>
import jax
import jax.numpy as jnp
from jax.experimental import pallas as pl
from jax.experimental.pallas import tpu as pltpu


def _calibrate_kernel(x_ref, w0_ref, b0_ref, w1_ref, b1_ref, o_ref):
    # x_ref : (C, tl)     pixel tile — channels on sublanes, pixels on lanes
    # w0_ref: (4C, C)     fused first layer  [scale_conv0 ; shift_conv0]
    # b0_ref: (4C, 1)
    # w1_ref: (2*Cp, 4C)  block-diagonal second layer (Cp = round_up(C, 8))
    # b1_ref: (2*Cp, 1)
    C = x_ref.shape[0]
    Cp = w1_ref.shape[0] // 2

    x = x_ref[...].astype(jnp.float32)
    w0 = w0_ref[...]
    w1 = w1_ref[...]

    # Fused first layer of both branches: (4C, C) @ (C, tl) -> (4C, tl)
    xm = x if w0.dtype == x.dtype else x.astype(w0.dtype)
    hh = jnp.dot(w0, xm, preferred_element_type=jnp.float32) + b0_ref[...]
    hh = jnp.where(hh >= 0, hh, 0.1 * hh)          # leaky_relu(0.1)

    # Block-diagonal second layer on the full hidden (no sublane slicing of hh)
    hm = hh if w1.dtype == hh.dtype else hh.astype(w1.dtype)
    out2 = jnp.dot(w1, hm, preferred_element_type=jnp.float32) + b1_ref[...]

    scale = out2[:C, :]            # rows [0, C)       — starts on row 0
    shift = out2[Cp:Cp + C, :]     # rows [Cp, Cp + C) — starts on a multiple of 8
    o_ref[...] = (x * scale + shift).astype(o_ref.dtype)


def _pack_params(p, compute_dtype=jnp.float32):
    """Pack 8 PyTorch-style (out, in) weights / (out,) biases into 4 arrays."""
    C = p["ws1"].shape[0]
    C2 = 2 * C
    Cp = -(-C // 8) * 8                                            # round up to 8

    w0 = jnp.concatenate([p["ws0"], p["wh0"]], axis=0)             # (4C, C)
    b0 = jnp.concatenate([p["bs0"], p["bh0"]], axis=0)[:, None]    # (4C, 1)

    # Block-diagonal second layer, each branch's output rows padded to 8.
    w1 = jnp.zeros((2 * Cp, 2 * C2), jnp.float32)
    w1 = w1.at[:C, :C2].set(p["ws1"]).at[Cp:Cp + C, C2:].set(p["wh1"])
    b1 = jnp.zeros((2 * Cp, 1), jnp.float32)
    b1 = b1.at[:C, 0].set(p["bs1"]).at[Cp:Cp + C, 0].set(p["bh1"])

    # Biases stay f32 (added after f32 accumulation); weights may drop to bf16.
    return w0.astype(compute_dtype), b0, w1.astype(compute_dtype), b1


def _choose_tile(C, HW, N):
    """Lane-tile size: ~1 MiB of x per block, bounded by VMEM and grid needs."""
    hw_pad = ((HW + 127) // 128) * 128
    target = (1 << 20) // (4 * C)                 # ~1 MiB of f32 x per block
    # ~12 f32 copies of a (C, tl) tile live at once (double-buffered in/out,
    # f32 upcast, hh, out2); keep them under ~24 MiB so the default 32 MiB
    # scoped VMEM limit (and v7x's 64 MiB physical per TC) has headroom.
    budget = (24 << 20) // (12 * 4 * C)
    tl = min(target, budget, hw_pad)
    tl = max(128, (tl // 128) * 128)
    # Keep >= 2 grid steps for a single image so both v7x TensorCores get work.
    if N == 1:
        while tl > 128 and -(-HW // tl) < 2:
            tl = max(128, ((tl // 2) // 128) * 128)
    return tl


def calibrate_layer_pallas(x_nchw, params, *, compute_dtype=None):
    """Forward pass of CalibrateLayer.

    x_nchw : (N, C, H, W) float32 (PyTorch layout, consumed natively)
    params : PyTorch-style weights: conv weight (out, in) with the 1x1 kernel
             squeezed, bias (out,).
    """
    N, C, H, W = x_nchw.shape
    HW = H * W
    x3d = x_nchw.reshape(N, C, HW)     # free reshape: spatial axis stays last

    if compute_dtype is None:
        # Compute-bound for C >~ 32: use bf16 matmul operands (f32 accumulate).
        compute_dtype = jnp.bfloat16 if C >= 32 else jnp.float32

    w0, b0, w1, b1 = _pack_params(params, compute_dtype)
    C4 = 4 * C
    Cp2 = w1.shape[0]

    tl = _choose_tile(C, HW, N)
    n_tiles = pl.cdiv(HW, tl)

    out3d = pl.pallas_call(
        _calibrate_kernel,
        out_shape=jax.ShapeDtypeStruct((N, C, HW), x_nchw.dtype),
        grid_spec=pltpu.PrefetchScalarGridSpec(
            num_scalar_prefetch=0,
            grid=(N, n_tiles),
            in_specs=[
                pl.BlockSpec((None, C, tl), lambda n, t: (n, 0, t)),  # x tile
                pl.BlockSpec((C4, C), lambda n, t: (0, 0)),    # fused conv0 W
                pl.BlockSpec((C4, 1), lambda n, t: (0, 0)),    # fused conv0 b
                pl.BlockSpec((Cp2, C4), lambda n, t: (0, 0)),  # block-diag conv1 W
                pl.BlockSpec((Cp2, 1), lambda n, t: (0, 0)),   # block-diag conv1 b
            ],
            out_specs=pl.BlockSpec((None, C, tl), lambda n, t: (n, 0, t)),
        ),
        compiler_params=pltpu.CompilerParams(
            dimension_semantics=("parallel", "parallel"),
        ),
    )(x3d, w0, b0, w1, b1)

    return out3d.reshape(N, C, H, W)


def init_params(key, dim):
    """PyTorch-default-like init. Conv2d(in, out, 1) weight stored as (out, in)."""
    C, C2 = dim, 2 * dim
    ks = jax.random.split(key, 8)
    u = lambda k, shape, fan_in: jax.random.uniform(
        k, shape, jnp.float32, -1.0 / jnp.sqrt(fan_in), 1.0 / jnp.sqrt(fan_in))
    return {
        "ws0": u(ks[0], (C2, C), C),  "bs0": u(ks[1], (C2,), C),
        "ws1": u(ks[2], (C, C2), C2), "bs1": u(ks[3], (C,), C2),
        "wh0": u(ks[4], (C2, C), C),  "bh0": u(ks[5], (C2,), C),
        "wh1": u(ks[6], (C, C2), C2), "bh1": u(ks[7], (C,), C2),
    }


def calibrate_layer_ref(x_nchw, p):
    """Pure-JAX reference matching PyTorch semantics (1x1 convs on NCHW)."""
    def conv1x1(x, w, b):
        return jnp.einsum("oi,nihw->nohw", w, x) + b[None, :, None, None]

    lrelu = lambda v: jnp.where(v >= 0, v, 0.1 * v)
    scale = conv1x1(lrelu(conv1x1(x_nchw, p["ws0"], p["bs0"])), p["ws1"], p["bs1"])
    shift = conv1x1(lrelu(conv1x1(x_nchw, p["wh0"], p["bh0"])), p["wh1"], p["bh1"])
    return x_nchw * scale + shift


if __name__ == "__main__":
    key = jax.random.PRNGKey(0)
    k_x, k_p, k_x2 = jax.random.split(key, 3)

    dim = 4
    N, H, W = 2, 16, 16
    x = jax.random.normal(k_x, (N, dim, H, W), jnp.float32)   # NCHW like PyTorch
    params = init_params(k_p, dim)

    out = jax.block_until_ready(calibrate_layer_pallas(x, params))
    ref = calibrate_layer_ref(x, params)
    assert out.shape == x.shape
    assert jnp.allclose(out, ref, atol=1e-4, rtol=1e-4), "mismatch vs reference"

    # Ragged / single-image case: HW not a multiple of the pixel tile, N == 1
    # (exercises masked writeback of the partial last tile and the >=2-step grid).
    x2 = jax.random.normal(k_x2, (1, dim, 10, 13), jnp.float32)
    out2 = jax.block_until_ready(calibrate_layer_pallas(x2, params))
    ref2 = calibrate_layer_ref(x2, params)
    assert jnp.allclose(out2, ref2, atol=1e-4, rtol=1e-4), "mismatch vs reference (ragged)"

    print("KERNEL_OK")
</pallas_src>

<mosaic_0001>
module attributes {stable_mosaic.version = 11 : i64} {
  func.func @_calibrate_kernel(%arg0: i32, %arg1: i32, %arg2: memref<1x4x256xf32, #tpu.memory_space<vmem>>, %arg3: memref<16x4xf32, #tpu.memory_space<vmem>>, %arg4: memref<16x1xf32, #tpu.memory_space<vmem>>, %arg5: memref<16x16xf32, #tpu.memory_space<vmem>>, %arg6: memref<16x1xf32, #tpu.memory_space<vmem>>, %arg7: memref<1x4x256xf32, #tpu.memory_space<vmem>>) attributes {dimension_semantics = [#tpu.dimension_semantics<parallel>, #tpu.dimension_semantics<parallel>], iteration_bounds = array<i64: 2, 1>, scalar_prefetch = 0 : i64, scratch_operands = 0 : i64, tpu.core_type = #tpu.core_type<tc>, window_params = [{transform_indices = @transform_0, window_bounds = array<i64: 1, 4, 256>}, {pipeline_mode = #tpu.pipeline_mode<synchronous>, transform_indices = @transform_1, window_bounds = array<i64: 16, 4>}, {pipeline_mode = #tpu.pipeline_mode<synchronous>, transform_indices = @transform_2, window_bounds = array<i64: 16, 1>}, {pipeline_mode = #tpu.pipeline_mode<synchronous>, transform_indices = @transform_3, window_bounds = array<i64: 16, 16>}, {pipeline_mode = #tpu.pipeline_mode<synchronous>, transform_indices = @transform_4, window_bounds = array<i64: 16, 1>}, {transform_indices = @transform_5, window_bounds = array<i64: 1, 4, 256>}]} {
    %c0 = arith.constant 0 : index
    %c0_0 = arith.constant 0 : index
    %c0_1 = arith.constant 0 : index
    %0 = vector.load %arg2[%c0, %c0_0, %c0_1] : memref<1x4x256xf32, #tpu.memory_space<vmem>>, vector<1x4x256xf32>
    %1 = vector.shape_cast %0 : vector<1x4x256xf32> to vector<4x256xf32>
    %c0_2 = arith.constant 0 : index
    %c0_3 = arith.constant 0 : index
    %2 = vector.load %arg3[%c0_2, %c0_3] : memref<16x4xf32, #tpu.memory_space<vmem>>, vector<16x4xf32>
    %c0_4 = arith.constant 0 : index
    %c0_5 = arith.constant 0 : index
    %3 = vector.load %arg5[%c0_4, %c0_5] : memref<16x16xf32, #tpu.memory_space<vmem>>, vector<16x16xf32>
    %cst = arith.constant dense<0.000000e+00> : vector<16x256xf32>
    %4 = tpu.matmul %2, %1, %cst {dimension_numbers = #tpu.dot_dimension_numbers<[1], [0], [0], [1], [0, 0, 1, 1], [], []>} : vector<16x4xf32>, vector<4x256xf32>, vector<16x256xf32> -> vector<16x256xf32>
    %c0_6 = arith.constant 0 : index
    %c0_7 = arith.constant 0 : index
    %5 = vector.load %arg4[%c0_6, %c0_7] : memref<16x1xf32, #tpu.memory_space<vmem>>, vector<16x1xf32>
    %6 = vector.broadcast %5 : vector<16x1xf32> to vector<16x256xf32>
    %7 = arith.addf %4, %6 : vector<16x256xf32>
    %cst_8 = arith.constant 0.000000e+00 : f32
    %8 = vector.broadcast %cst_8 : f32 to vector<16x256xf32>
    %9 = arith.cmpf oge, %7, %8 : vector<16x256xf32>
    %cst_9 = arith.constant 1.000000e-01 : f32
    %10 = vector.broadcast %cst_9 : f32 to vector<16x256xf32>
    %11 = arith.mulf %10, %7 : vector<16x256xf32>
    %12 = arith.select %9, %7, %11 : vector<16x256xi1>, vector<16x256xf32>
    %cst_10 = arith.constant dense<0.000000e+00> : vector<16x256xf32>
    %13 = tpu.matmul %3, %12, %cst_10 {dimension_numbers = #tpu.dot_dimension_numbers<[1], [0], [0], [1], [0, 0, 1, 1], [], []>} : vector<16x16xf32>, vector<16x256xf32>, vector<16x256xf32> -> vector<16x256xf32>
    %c0_11 = arith.constant 0 : index
    %c0_12 = arith.constant 0 : index
    %14 = vector.load %arg6[%c0_11, %c0_12] : memref<16x1xf32, #tpu.memory_space<vmem>>, vector<16x1xf32>
    %15 = vector.broadcast %14 : vector<16x1xf32> to vector<16x256xf32>
    %16 = arith.addf %13, %15 : vector<16x256xf32>
    %17 = vector.extract_strided_slice %16 {offsets = [0, 0], sizes = [4, 256], strides = [1, 1]} : vector<16x256xf32> to vector<4x256xf32>
    %18 = vector.extract_strided_slice %16 {offsets = [8, 0], sizes = [4, 256], strides = [1, 1]} : vector<16x256xf32> to vector<4x256xf32>
    %19 = arith.mulf %1, %17 : vector<4x256xf32>
    %20 = arith.addf %19, %18 : vector<4x256xf32>
    %c0_13 = arith.constant 0 : index
    %c0_14 = arith.constant 0 : index
    %c0_15 = arith.constant 0 : index
    %21 = vector.load %arg7[%c0_13, %c0_14, %c0_15] : memref<1x4x256xf32, #tpu.memory_space<vmem>>, vector<1x4x256xf32>
    %22 = vector.shape_cast %21 : vector<1x4x256xf32> to vector<4x256xf32>
    %23 = vector.shape_cast %20 : vector<4x256xf32> to vector<1x4x256xf32>
    tpu.vector_store %arg7[%c0_13, %c0_14, %c0_15], %23 {strides = array<i32>} : memref<1x4x256xf32, #tpu.memory_space<vmem>>, vector<1x4x256xf32>,
    return
  }
  func.func @transform_0(%arg0: i32, %arg1: i32) -> (i32, i32, i32) {
    %c0_i32 = arith.constant 0 : i32
    %c0_i32_0 = arith.constant 0 : i32
    return %arg0, %c0_i32, %arg1 : i32, i32, i32
  }
  func.func @transform_1(%arg0: i32, %arg1: i32) -> (i32, i32) {
    %c0_i32 = arith.constant 0 : i32
    %c0_i32_0 = arith.constant 0 : i32
    %c0_i32_1 = arith.constant 0 : i32
    return %c0_i32, %c0_i32_0 : i32, i32
  }
  func.func @transform_2(%arg0: i32, %arg1: i32) -> (i32, i32) {
    %c0_i32 = arith.constant 0 : i32
    %c0_i32_0 = arith.constant 0 : i32
    %c0_i32_1 = arith.constant 0 : i32
    return %c0_i32, %c0_i32_0 : i32, i32
  }
  func.func @transform_3(%arg0: i32, %arg1: i32) -> (i32, i32) {
    %c0_i32 = arith.constant 0 : i32
    %c0_i32_0 = arith.constant 0 : i32
    %c0_i32_1 = arith.constant 0 : i32
    return %c0_i32, %c0_i32_0 : i32, i32
  }
  func.func @transform_4(%arg0: i32, %arg1: i32) -> (i32, i32) {
    %c0_i32 = arith.constant 0 : i32
    %c0_i32_0 = arith.constant 0 : i32
    %c0_i32_1 = arith.constant 0 : i32
    return %c0_i32, %c0_i32_0 : i32, i32
  }
  func.func @transform_5(%arg0: i32, %arg1: i32) -> (i32, i32, i32) {
    %c0_i32 = arith.constant 0 : i32
    %c0_i32_0 = arith.constant 0 : i32
    return %arg0, %c0_i32, %arg1 : i32, i32, i32
  }
}

</mosaic_0001>

<bundles_post_ra>
// kernel: tpu_custom_call.1
= control target key start
LH: loop header
LB: loop body
LE: loop exit
PB: predicated region body
PF: predicated region fallthrough
CT: control target
= control target key end

     0   :  { %10 = vsyncpa [#allocation3], 0  ;;  %s841_s0 = inlined_call_operand.vmem [shape: f32[2,4,256], index: 0, kind: input, shape index: {}]   ;;  %s842_s1 = inlined_call_operand.vmem [shape: f32[16,4], index: 1, kind: input, shape index: {}]   ;;  %s843_s2 = inlined_call_operand.vmem [shape: f32[16,1], index: 2, kind: input, shape index: {}]   ;;  %s844_s3 = inlined_call_operand.vmem [shape: f32[16,16], index: 3, kind: input, shape index: {}]   ;;  %s845_s4 = inlined_call_operand.vmem [shape: f32[16,1], index: 4, kind: input, shape index: {}]   ;;  %s846_s5 = inlined_call_operand.hbm [shape: f32[2,4,256], index: 5, kind: output, shape index: {}]  }
   0x1   :  { %12 = vsyncpa [#allocation3 + $0x1], 0  ;;  %s712_s18 = smov 0   ;;  %s714_s19 = smov 0  }
   0x2   :  { %s716_s20 = smov 0   ;;  %s718_s21 = smov 0  }
   0x3   :  { %s720_s22 = smov 0   ;;  %s722_s23 = smov 0  }
   0x4 LB: > { %s518_s24 = sadd.s32 4294967295, %s679_s23   ;;  %s519_s25 = sadd.s32 4294967294, %s679_s23   ;;  %s679_s23 = sphi %s722_s23, %s18_s23   ;;  %s675_s22 = sphi %s720_s22, %s853_s22   ;;  %s671_s21 = sphi %s718_s21, %s852_s21   ;;  %s667_s20 = sphi %s716_s20, %s851_s20   ;;  %s663_s19 = sphi %s714_s19, %s850_s19   ;;  %s659_s18 = sphi %s712_s18, %s849_s18  }
   0x5   : > { %s30_s26 = sadd.s32 1, %s675_s22  ;;  %s151_s27 = sadd.s32 1, %s667_s20 }
   0x6   : > { %p32_p0 = scmp.ge.s32.totalorder %s30_s26, 2  ;;  %p161_p1 = scmp.ne.s32.totalorder %s667_s20, %s663_s19 }
   0x7   : > { %p162_p2 = scmp.eq.s32.totalorder %s518_s24, 1  ;;  %p167_p3 = scmp.ne.s32.totalorder %s663_s19, %s659_s18 }
   0x8   : > { %s855_s26 = smov (%p32_p0, %s30_s26), 0  ;;  %p168_p5 = scmp.eq.s32.totalorder %s519_s25, 1 }
   0x9   : > { %p752_p4 = por %p162_p2, %p161_p1  ;;  %s146_s29 = ssub.s32 %s675_s22, %s855_s26 }
   0xa   : > { %p522_p6 = scmp.ge.s32.totalorder %s679_s23, 1  ;;  %p149_p7 = scmp.eq.s32.totalorder %s146_s29, 0 }
   0xb   : > { %p759_p8 = por %p168_p5, %p167_p3  ;;  %p211_p9 = scmp.lt.s32.totalorder %s679_s23, 3 }
   0xc   : > { %s765_s6 = scalar_select %p149_p7, %s667_s20, %s151_s27  }
   0xd   : > { %p212_p10 = pnand %p522_p6, %p211_p9 }
   0xe   : > { %p244_p11 = scmp.lt.s32.totalorder (!%p212_p10), %s671_s21, 1  ;;  %s542_s15 = sshll.u32 (!%p212_p10), %s671_s21, 3 }
   0xf   : > { %215 = sbr.rel (%p212_p10) target bundleno = 326 (0x146), region = 40  ;;  %s437_s24 = scalar_lea.hbm (!%p212_p10), %s846_s5, %s542_s15 }
  0x10   : > { %s441_s29 = sshll.u32 (!%p212_p10), %s437_s24, 4  ;;  %s621_s11 = scalar_lea.hbm (!%p212_p10), %s846_s5, 16  ;;  %s442_s29 = int_to_ptr.hbm [resolvable:$true] %s441_s29 }
  0x11   : > { %s615_s7 = sshra.s32 (!%p212_p10), %s442_s29, 4  ;;  %s616_s7 = int_to_ptr.hbm [resolvable:$true] %s615_s7 }
  0x12   : > { %s617_s8 = scalar_lea.hbm (!%p212_p10), %s616_s7, 8  ;;  %p622_p1 = scmp.lt.s32.totalorder (!%p212_p10), %s616_s7, %s846_s5 }
  0x13   : > { %p618_p12 = scmp.ne.s32.totalorder (!%p212_p10), %s616_s7, %s617_s8  ;;  %p623_p2 = scmp.lt.s32.totalorder (!%p212_p10), %s621_s11, %s617_s8 }
  0x14   : > { %v260_v0 = vld [vmem:[%s843_s2 + $0x8] sm:$0xff]  ;;  %v681_v1 = vmov 0   ;;  %s245_s9 = scalar_select %p244_p11, %s671_s21, 1  ;;  %v259_v3 = vld [vmem:[%s843_s2] sm:$0xff]  ;;  %vm282_vm0 = vcmask 1043456   ;;  %vm275_vm1 = vcmask 31744  }
  0x15   : > { %599 = vset.pattern.permute.xlu0 %v681_v1  ;;  %600 = vset.pattern.permute.xlu1 %v681_v1  ;;  %v255_v4 = vld [vmem:[%s842_s1] sm:$0xff]  ;;  %v256_v7 = vld [vmem:[%s842_s1 + $0x8] sm:$0xff]  ;;  %vm357_vm6 = vcmask 130048   ;;  %p619_p13 = pnand %p618_p12, %p752_p4  ;;  %p624_p3 = por %p623_p2, %p622_p1 }
  0x16   : > { %268 = vperm.xlu0 %599, %v260_v0   ;;  %s541_s10 = sshll.u32 %s245_s9, 3  ;;  %v345_v9 = vld [vmem:[%s845_s4] sm:$0xff]  ;;  %v346_v10 = vld [vmem:[%s845_s4 + $0x8] sm:$0xff] }
  0x17   : > { %s251_s13 = scalar_lea.vmem %s841_s0, %s541_s10  ;;  %349 = vperm.xlu1 %600, %v345_v9   ;;  %v257_v26 = vld [vmem:[%s844_s3] sm:$0xff]  ;;  %v258_v29 = vld [vmem:[%s844_s3 + $0x8] sm:$0xff]  ;;  %p620_p0 = pneg %p619_p13 }
  0x18   : > { %v775_v2 = vld [vmem:[%s251_s13] sm:$0xff]  ;;  %s240_s13 = sand.u32 1, %s663_s19  }
  0x19   : > { %272 = vst [vmem:[#allocation1] ss:$2 sm:$0xff] %v775_v2  ;;  %s523_s14 = sshll.u32 %s240_s13, 3  ;;  %s424_s21 = scalar_lea.sflag [#allocation3], %s240_s13 }
  0x1a   : > { %s242_s25 = scalar_lea.vmem [#allocation2], %s523_s14  ;;  %p625_p5 = pnand %p624_p3, %p620_p0 }
  0x1b   : > { %s439_s27 = sshll.u32 %s242_s25, 4  ;;  %s440_s27 = int_to_ptr.vmem [resolvable:$true] %s439_s27 }
  0x1e   : > { %263 = vperm.xlu0 %599, %v259_v3  }
  0x1f   : > { %354 = vperm.xlu1 %600, %v346_v10  }
  0x20   : > { %v273_v5 = vld.sshfl [vmem:[#allocation1] sm:$0xff pattern:$0x75316420]  ;;  %v274_v6 = vld.sshfl [vmem:[#allocation1 + $0x8] sm:$0xff pattern:$0x75316420] }
  0x21   : > { %526 = vmatpush.msk.msra.mxu0 %vm282_vm0, %v273_v5  ;;  %529 = vmatpush.msk.msra.mxu1 %vm282_vm0, %v274_v6 }
  0x22   : > { %527 = vmatmul.msk.f32.vlgmr.msra.gmra.mxu0 %vm275_vm1, %v255_v4  ;;  %530 = vmatmul.msk.f32.vlgmr.msra.gmra.mxu1 %vm275_vm1, %v255_v4 }
  0x2a   : > { %528 = vmatmul.msk.f32.gmra.mxu0 %vm275_vm1, %v256_v7  ;;  %531 = vmatmul.msk.f32.gmra.mxu1 %vm275_vm1, %v256_v7 }
  0x88   : > { %v269_v8 = vpop.permute.xlu0 %268 }
  0x89   : > { %v350_v30 = vpop.permute.xlu1 %349 }
  0x90   : > { %v264_v13 = vpop.permute.xlu0 %263 }
  0x91   : > { %v355_v35 = vpop.permute.xlu1 %354 }
  0x9f   : > { %v304_v11 = vpop.f32.mrf.mxu0  ;;  %v327_v12 = vpop.f32.mrf.mxu1 }
  0xa0   : > { %v305_v14 = vadd.f32 %v304_v11, %v264_v13  ;;  %v328_v15 = vadd.f32 %v327_v12, %v264_v13 }
  0xa2   : > { %v337_v20 = vmul.f32 0.1, %v305_v14  ;;  %v338_v21 = vmul.f32 0.1, %v328_v15  ;;  %vm333_vm4 = vcmp.ge.f32.partialorder %v305_v14, 0.0  ;;  %vm334_vm5 = vcmp.ge.f32.partialorder %v328_v15, 0.0 }
  0xa4   : > { %v341_v27 = vsel %vm333_vm4, %v305_v14, %v337_v20  ;;  %v342_v28 = vsel %vm334_vm5, %v328_v15, %v338_v21 }
  0xa7   : > { %v307_v16 = vpop.f32.mrf.mxu0  ;;  %v330_v17 = vpop.f32.mrf.mxu1 }
  0xa8   : > { %v308_v18 = vadd.f32 %v307_v16, %v269_v8  ;;  %v331_v19 = vadd.f32 %v330_v17, %v269_v8 }
  0xaa   : > { %vm335_vm2 = vcmp.ge.f32.partialorder %v308_v18, 0.0  ;;  %v339_v22 = vmul.f32 0.1, %v308_v18  ;;  %vm336_vm3 = vcmp.ge.f32.partialorder %v331_v19, 0.0  ;;  %v340_v23 = vmul.f32 0.1, %v331_v19 }
  0xac   : > { %v343_v24 = vsel %vm335_vm2, %v308_v18, %v339_v22  ;;  %v344_v25 = vsel %vm336_vm3, %v331_v19, %v340_v23 }
  0xad   : > { %378 = vmatpush.msra.mxu2 %v343_v24  ;;  %401 = vmatpush.msra.mxu3 %v344_v25 }
  0xaf   : > { %379 = vmatpush.msra.mxu2 %v341_v27  ;;  %402 = vmatpush.msra.mxu3 %v342_v28 }
  0xb0   : > { %532 = vmatmul.msk.f32.vlgmr.msra.gmra.mxu2 %vm357_vm6, %v257_v26  ;;  %534 = vmatmul.msk.f32.vlgmr.msra.gmra.mxu3 %vm357_vm6, %v257_v26 }
  0xb8   : > { %533 = vmatmul.msk.f32.gmra.mxu2 %vm357_vm6, %v258_v29  ;;  %535 = vmatmul.msk.f32.gmra.mxu3 %vm357_vm6, %v258_v29 }
 0x133   : > { %v381_v31 = vpop.f32.mrf.mxu2  ;;  %v404_v32 = vpop.f32.mrf.mxu3 }
 0x134   : > { %v405_v33 = vadd.f32 %v404_v32, %v350_v30  ;;  %v382_v36 = vadd.f32 %v381_v31, %v350_v30 }
 0x136   : > { %v412_v34 = vrot.slane %v405_v33, 4 }
 0x138   : > { %v413_v39 = vsel %vm282_vm0, %v382_v36, %v412_v34 }
 0x139   : > { %v415_v43 = vmul.f32 %v413_v39, %v775_v2 }
 0x13b   : > { %v384_v37 = vpop.f32.mrf.mxu2  ;;  %v407_v38 = vpop.f32.mrf.mxu3 }
 0x13c   : > { %v408_v40 = vadd.f32 %v407_v38, %v355_v35  ;;  %v385_v41 = vadd.f32 %v384_v37, %v355_v35 }
 0x13e   : > { %v418_v42 = vrot.slane %v408_v40, 4 }
 0x140   : > { %v419_v44 = vsel %vm282_vm0, %v385_v41, %v418_v42 }
 0x141   : > { %v421_v45 = vadd.f32 %v419_v44, %v415_v43 }
 0x143   : > { %422 = vst [vmem:[%s242_s25] sm:$0xff] %v421_v45 }
 0x144   : > { %628 = shalt.err (!%p625_p5)
}
 0x145   : > { %543 = dma.vmem_to_hbm [thread:$0]  (%p752_p4), %s440_s27, 128, %s442_s29, %s424_s21  }
 0x146 PF: > { %p549_p6 = scmp.ge.s32.totalorder %s679_s23, 2  ;;  %s453_s13 = sand.u32 1, %s659_s18  }
 0x147   : > { %s454_s15 = scalar_lea.sflag [#allocation3], %s453_s13 }
 0x148   : > { %p546_p7 = pnand %p549_p6, %p759_p8 }
 0x14a   : > { %p547_p9 = pneg %p546_p7 }
 0x14c   : > { %654 = dma.done.wait (%p547_p9), %s454_s15, 128  }
 0x14d   : > { %656 = vsyncadd (%p547_p9), %s454_s15, 4294967168  ;;  %s18_s23 = sadd.s32 1, %s679_s23   ;;  %s849_s18 = smov %s663_s19 }
 0x14e   : > { %p15_p10 = scmp.ge.s32.totalorder %s18_s23, 4   ;;  %s850_s19 = smov %s667_s20 }
 0x14f   : > { %s851_s20 = smov %s765_s6  ;;  %s852_s21 = smov %s675_s22 }
 0x150   : > { %s853_s22 = smov %s855_s26  ;;  %17 = sbr.rel (!%p15_p10) target bundleno = 4 (0x4), region = 75 }
 0x155   :  { %460 = vsyncpa [#allocation3], 1 }
 0x156   :  { %462 = vsyncpa [#allocation3 + $0x1], 1 }

</bundles_post_ra>
